<compile_context>
chip_gen: v5e
topology: v5e:2x2
jax: 0.10.0
libtpu: 0.0.40
codegen_flags: <defaults>
</compile_context>

<pallas_src>
import jax
import jax.numpy as jnp
from jax.experimental import pallas as pl
from jax.experimental.pallas import tpu as pltpu


def _round_up(x, m):
    return ((x + m - 1) // m) * m


def _cdiv(a, b):
    return -(-a // b)


def attention_kernel(x_ref, w_ref, b_ref, o_ref):
    # x_ref : (Bb, T, Hp)  batch slab (native dtype)         VMEM
    # w_ref : (1, 1, Hp)   shared linear weight (resident)   VMEM
    # b_ref : (1, 1)       linear bias (f32 scalar)          SMEM
    # o_ref : (Bb, Hp)     pooled context for this slab
    x = x_ref[...]                          # native dtype; no full-slab f32 copy
    in_dtype = x.dtype
    w = w_ref[...].astype(in_dtype)         # (1, 1, Hp)
    bias = b_ref[0, 0]                      # f32 scalar

    # Scores kept as (Bb, T, 1): T stays on the sublane axis end-to-end, so the
    # softmax weights broadcast against x directly along lanes (no relayout).
    # Multiply in the input dtype; accumulate the lane reduce in f32.
    scores = jnp.sum(x * w, axis=-1, keepdims=True, dtype=jnp.float32) + bias

    # Numerically stable softmax over T (sublane axis), kept unnormalized.
    m = jnp.max(scores, axis=1, keepdims=True)            # (Bb, 1, 1)
    e = jnp.exp(scores - m)                                # (Bb, T, 1), f32
    denom = jnp.sum(e, axis=1, keepdims=True)              # (Bb, 1, 1)

    # Unnormalized weighted sum over T: multiply in the input dtype (bf16 stays
    # bf16 -> half the in-kernel bytes/VMEM), accumulate in f32.
    ctx = jnp.sum(x * e.astype(in_dtype), axis=1, dtype=jnp.float32)   # (Bb, Hp)

    # One exact reciprocal per row (per-row divide only, keeps f32 tolerance).
    inv = 1.0 / denom[:, 0, :]                             # (Bb, 1)
    o_ref[...] = (ctx * inv).astype(o_ref.dtype)


def _choose_block_b(B, T, Hp, in_itemsize,
                    vmem_data_budget_bytes=20 * 1024 * 1024):
    """Per-step batch rows.

    Effective per-row footprint = double-buffered native input slab plus ~2
    f32-sized body temps. block_b is always a multiple of 8 (sublane-aligned
    output stores). Prefer >=4 grid steps (>=2 per TensorCore on dual-TC
    chips) when the batch is big enough; never shrink a slab below 8 rows.
    """
    per_row = (2 * in_itemsize + 2 * 4) * T * Hp
    bb = max(8, (vmem_data_budget_bytes // max(per_row, 1)) // 8 * 8)
    if B <= bb:
        return _round_up(B, 8)          # single slab covers the (padded) batch
    if _cdiv(B, bb) < 4 and B >= 32:
        bb = min(bb, max(8, _round_up(_cdiv(B, 4), 8)))
    return bb


def attention_forward(lstm_out, weight, bias, *, block_b=None,
                      vmem_data_budget_bytes=20 * 1024 * 1024):
    """lstm_out: (B, T, H); weight: (1, H) (PyTorch Linear layout); bias: (1,)."""
    B, T, H = lstm_out.shape
    in_dtype = lstm_out.dtype
    itemsize = jnp.dtype(in_dtype).itemsize

    # Lane-dense kernel I/O: pad H to a multiple of 128. Zero-padded weight
    # columns contribute nothing to scores or context; padded output columns
    # are sliced off after the call.
    Hp = _round_up(H, 128)

    if block_b is None:
        block_b = _choose_block_b(B, T, Hp, itemsize, vmem_data_budget_bytes)
    block_b = max(8, _round_up(block_b, 8))

    # Sublane-aligned batch: pad B up to a multiple of block_b. Zero rows give
    # a uniform softmax over zeros (finite), and are sliced off afterwards.
    Bp = _round_up(B, block_b)
    grid_b = Bp // block_b

    x = lstm_out
    if Bp != B or Hp != H:
        x = jnp.pad(x, ((0, Bp - B), (0, 0), (0, Hp - H)))
    w3 = jnp.pad(weight.reshape(1, 1, H).astype(in_dtype),
                 ((0, 0), (0, 0), (0, Hp - H)))
    b2 = bias.reshape(1, 1).astype(jnp.float32)

    # Honest VMEM accounting: double-buffered native input slab + ~2 f32 body
    # temps + double-buffered output blocks + resident weight + headroom.
    # Capped well inside v7x's 64 MiB physical VMEM.
    slab = block_b * T * Hp
    need = (2 * slab * itemsize            # double-buffered input slab
            + 2 * slab * 4                 # in-kernel f32 temporaries
            + 4 * block_b * Hp * 4         # output blocks + ctx/scores temps
            + (2 << 20))                   # weight, scalars, compiler headroom
    vmem_limit = int(min(48 * 1024 * 1024, max(need, 16 * 1024 * 1024)))

    out = pl.pallas_call(
        attention_kernel,
        out_shape=jax.ShapeDtypeStruct((Bp, Hp), in_dtype),
        grid_spec=pltpu.PrefetchScalarGridSpec(
            num_scalar_prefetch=0,
            grid=(grid_b,),
            in_specs=[
                pl.BlockSpec((block_b, T, Hp), lambda b: (b, 0, 0)),   # batch slab
                pl.BlockSpec((1, 1, Hp), lambda b: (0, 0, 0)),         # resident weight
                pl.BlockSpec(memory_space=pltpu.MemorySpace.SMEM),     # bias scalar
            ],
            out_specs=pl.BlockSpec((block_b, Hp), lambda b: (b, 0)),
        ),
        compiler_params=pltpu.CompilerParams(
            dimension_semantics=("parallel",),
            vmem_limit_bytes=vmem_limit,
        ),
    )(x, w3, b2)

    return out[:B, :H]


def attention_reference(lstm_out, weight, bias):
    scores = jnp.einsum("bth,oh->bto", lstm_out, weight) + bias  # (B, T, 1)
    attn = jax.nn.softmax(scores, axis=1)
    return jnp.sum(attn * lstm_out, axis=1)                      # (B, H)


if __name__ == "__main__":
    key = jax.random.PRNGKey(0)
    B, T, H = 2, 8, 32

    k_x, k_w, k_b = jax.random.split(key, 3)
    lstm_out = jax.random.normal(k_x, (B, T, H), dtype=jnp.float32)

    # Matches PyTorch Linear init scheme: uniform in [-1/sqrt(H), 1/sqrt(H)].
    bound = 1.0 / jnp.sqrt(jnp.float32(H))
    weight = jax.random.uniform(k_w, (1, H), minval=-bound, maxval=bound,
                                dtype=jnp.float32)
    bias = jax.random.uniform(k_b, (1,), minval=-bound, maxval=bound,
                              dtype=jnp.float32)

    out = attention_forward(lstm_out, weight, bias)
    out = jax.block_until_ready(out)

    ref = attention_reference(lstm_out, weight, bias)
    assert out.shape == (B, H)
    assert jnp.allclose(out, ref, atol=1e-5, rtol=1e-5), \
        float(jnp.max(jnp.abs(out - ref)))

    print("KERNEL_OK")
</pallas_src>

<mosaic_0001>
module attributes {stable_mosaic.version = 11 : i64} {
  func.func @attention_kernel(%arg0: i32, %arg1: memref<8x8x128xf32, #tpu.memory_space<vmem>>, %arg2: memref<1x1x128xf32, #tpu.memory_space<vmem>>, %arg3: memref<1x1xf32, #tpu.memory_space<smem>>, %arg4: memref<8x128xf32, #tpu.memory_space<vmem>>) attributes {dimension_semantics = [#tpu.dimension_semantics<parallel>], iteration_bounds = array<i64: 1>, scalar_prefetch = 0 : i64, scratch_operands = 0 : i64, tpu.core_type = #tpu.core_type<tc>, window_params = [{transform_indices = @transform_0, window_bounds = array<i64: 8, 8, 128>}, {pipeline_mode = #tpu.pipeline_mode<synchronous>, transform_indices = @transform_1, window_bounds = array<i64: 1, 1, 128>}, {transform_indices = @transform_2, window_bounds = array<i64: 1, 1>}, {transform_indices = @transform_3, window_bounds = array<i64: 8, 128>}]} {
    %c0 = arith.constant 0 : index
    %c0_0 = arith.constant 0 : index
    %c0_1 = arith.constant 0 : index
    %0 = vector.load %arg1[%c0, %c0_0, %c0_1] : memref<8x8x128xf32, #tpu.memory_space<vmem>>, vector<8x8x128xf32>
    %c0_2 = arith.constant 0 : index
    %c0_3 = arith.constant 0 : index
    %c0_4 = arith.constant 0 : index
    %1 = vector.load %arg2[%c0_2, %c0_3, %c0_4] : memref<1x1x128xf32, #tpu.memory_space<vmem>>, vector<1x1x128xf32>
    %c0_5 = arith.constant 0 : index
    %c0_6 = arith.constant 0 : index
    %2 = memref.load %arg3[%c0_5, %c0_6] : memref<1x1xf32, #tpu.memory_space<smem>>
    %3 = vector.broadcast %1 : vector<1x1x128xf32> to vector<8x8x128xf32>
    %4 = arith.mulf %0, %3 : vector<8x8x128xf32>
    %cst = arith.constant dense<0.000000e+00> : vector<8x8xf32>
    %5 = vector.multi_reduction <add>, %4, %cst [2] : vector<8x8x128xf32> to vector<8x8xf32>
    %6 = vector.shape_cast %5 : vector<8x8xf32> to vector<8x8x1xf32>
    %7 = vector.broadcast %2 : f32 to vector<8x8x1xf32>
    %8 = arith.addf %6, %7 : vector<8x8x1xf32>
    %cst_7 = arith.constant dense<0xFF800000> : vector<8x1xf32>
    %9 = vector.multi_reduction <maximumf>, %8, %cst_7 [1] : vector<8x8x1xf32> to vector<8x1xf32>
    %10 = vector.shape_cast %9 : vector<8x1xf32> to vector<8x1x1xf32>
    %11 = vector.broadcast %10 : vector<8x1x1xf32> to vector<8x8x1xf32>
    %12 = arith.subf %8, %11 : vector<8x8x1xf32>
    %13 = math.exp %12 : vector<8x8x1xf32>
    %cst_8 = arith.constant dense<0.000000e+00> : vector<8x1xf32>
    %14 = vector.multi_reduction <add>, %13, %cst_8 [1] : vector<8x8x1xf32> to vector<8x1xf32>
    %15 = vector.shape_cast %14 : vector<8x1xf32> to vector<8x1x1xf32>
    %16 = vector.broadcast %13 : vector<8x8x1xf32> to vector<8x8x128xf32>
    %17 = arith.mulf %0, %16 : vector<8x8x128xf32>
    %cst_9 = arith.constant dense<0.000000e+00> : vector<8x128xf32>
    %18 = vector.multi_reduction <add>, %17, %cst_9 [1] : vector<8x8x128xf32> to vector<8x128xf32>
    %19 = vector.shape_cast %15 : vector<8x1x1xf32> to vector<8x1xf32>
    %cst_10 = arith.constant 1.000000e+00 : f32
    %20 = vector.broadcast %cst_10 : f32 to vector<8x1xf32>
    %21 = arith.divf %20, %19 : vector<8x1xf32>
    %22 = vector.broadcast %21 : vector<8x1xf32> to vector<8x128xf32>
    %23 = arith.mulf %18, %22 : vector<8x128xf32>
    %c0_11 = arith.constant 0 : index
    %c0_12 = arith.constant 0 : index
    %24 = vector.load %arg4[%c0_11, %c0_12] : memref<8x128xf32, #tpu.memory_space<vmem>>, vector<8x128xf32>
    tpu.vector_store %arg4[%c0_11, %c0_12], %23 {strides = array<i32>} : memref<8x128xf32, #tpu.memory_space<vmem>>, vector<8x128xf32>,
    return
  }
  func.func @transform_0(%arg0: i32) -> (i32, i32, i32) {
    %c0_i32 = arith.constant 0 : i32
    %c0_i32_0 = arith.constant 0 : i32
    %c0_i32_1 = arith.constant 0 : i32
    return %arg0, %c0_i32, %c0_i32_0 : i32, i32, i32
  }
  func.func @transform_1(%arg0: i32) -> (i32, i32, i32) {
    %c0_i32 = arith.constant 0 : i32
    %c0_i32_0 = arith.constant 0 : i32
    %c0_i32_1 = arith.constant 0 : i32
    %c0_i32_2 = arith.constant 0 : i32
    return %c0_i32, %c0_i32_0, %c0_i32_1 : i32, i32, i32
  }
  func.func @transform_2(%arg0: i32) -> (i32, i32) {
    %c0_i32 = arith.constant 0 : i32
    %c0_i32_0 = arith.constant 0 : i32
    %c0_i32_1 = arith.constant 0 : i32
    return %c0_i32, %c0_i32_0 : i32, i32
  }
  func.func @transform_3(%arg0: i32) -> (i32, i32) {
    %c0_i32 = arith.constant 0 : i32
    %c0_i32_0 = arith.constant 0 : i32
    return %arg0, %c0_i32 : i32, i32
  }
}

</mosaic_0001>

<bundles_post_ra>
// kernel: tpu_custom_call.1
= control target key start
LH: loop header
LB: loop body
LE: loop exit
PB: predicated region body
PF: predicated region fallthrough
CT: control target
= control target key end

     0   :  { %9 = vsyncpa [#allocation4], 0  ;;  %s801_s0 = inlined_call_operand.hbm [shape: f32[8,8,128], index: 0, kind: input, shape index: {}]   ;;  %s802_s1 = inlined_call_operand.vmem [shape: f32[1,1,128], index: 1, kind: input, shape index: {}]   ;;  %s803_s2 = inlined_call_operand.<no memory space> [shape: f32[1,1], index: 2, kind: input, shape index: {}]   ;;  %s804_s3 = inlined_call_operand.hbm [shape: f32[8,128], index: 3, kind: output, shape index: {}]  }
   0x1   :  { %10 = vsyncpa [#allocation5], 0  ;;  %s15_s14 = sshll.u32 %s801_s0, 4  ;;  %s512_s15 = smov [#allocation3]   ;;  %s16_s14 = int_to_ptr.hbm [resolvable:$true] %s15_s14 }
   0x2   :  { %s17_s16 = sshll.u32 %s512_s15, 4  ;;  %s513_s17 = smov 128   ;;  %s18_s16 = int_to_ptr.vmem [resolvable:$true] %s17_s16 }
   0x3   :  { %s514_s18 = smov 8  }
   0x4   :  { %23 = dma.hbm_to_vmem [thread:$0]  %s16_s14, 1024, %s18_s16, [#allocation4], %s513_s17, %s513_s17, %s514_s18  }
   0x5   :  { %508 = dma.done.wait [#allocation4], 1024  }
   0x6   :  { %509 = vsyncadd [#allocation4], 4294966272  ;;  %v539_v0 = vld [vmem:[#allocation3 + $0x20] sm:$0xff]  ;;  %v544_v2 = vld [vmem:[#allocation3 + $0x10] sm:$0xff]  ;;  %v69_v17 = vstv %s803_s2  ;;  %s515_s2 = smov [#allocation6]   ;;  %s413_s24 = sshll.u32 %s804_s3, 4  ;;  %s414_s24 = int_to_ptr.hbm [resolvable:$true] %s413_s24 }
   0x7   :  { %v427_v1 = vld [vmem:[%s802_s1] ss:$0 sm:$0xff]  ;;  %v551_v7 = vld [vmem:[#allocation3 + $0x28] sm:$0xff]  ;;  %v553_v8 = vld [vmem:[#allocation3 + $0x18] sm:$0xff]  ;;  %s411_s21 = sshll.u32 %s515_s2, 4  ;;  %s412_s21 = int_to_ptr.vmem [resolvable:$true] %s411_s21 }
   0x8   :  { %v546_v3 = vld [vmem:[#allocation3] sm:$0xff]  ;;  %v49_v4 = vmul.f32 %v427_v1, %v539_v0  ;;  %v47_v5 = vmul.f32 %v427_v1, %v544_v2  ;;  %v555_v9 = vld [vmem:[#allocation3 + $0x8] sm:$0xff]  ;;  %v50_v10 = vmul.f32 %v427_v1, %v551_v7  ;;  %v48_v11 = vmul.f32 %v427_v1, %v553_v8  ;;  %v560_v13 = vld [vmem:[#allocation3 + $0x38] sm:$0xff] }
   0x9   :  { %v45_v6 = vmul.f32 %v427_v1, %v546_v3  ;;  %v46_v12 = vmul.f32 %v427_v1, %v555_v9  ;;  %v562_v14 = vld [vmem:[#allocation3 + $0x30] sm:$0xff]  ;;  %v52_v15 = vmul.f32 %v427_v1, %v560_v13 }
   0xa   :  { %61 = vadd.xlane.f32.xlu2 %v49_v4  ;;  %57 = vadd.xlane.f32.xlu1 %v47_v5  ;;  %v51_v16 = vmul.f32 %v427_v1, %v562_v14 }
   0xb   :  { %53 = vadd.xlane.f32.xlu0 %v45_v6 }
  0x12   :  { %63 = vadd.xlane.f32.xlu2 %v50_v10  ;;  %59 = vadd.xlane.f32.xlu1 %v48_v11 }
  0x13   :  { %55 = vadd.xlane.f32.xlu0 %v46_v12 }
  0x1a   :  { %67 = vadd.xlane.f32.xlu1 %v52_v15 }
  0x1b   :  { %65 = vadd.xlane.f32.xlu0 %v51_v16 }
  0x7d   :  { %v62_v18 = vpop.xlane.xlu2 %61  ;;  %v58_v19 = vpop.xlane.xlu1 %57 }
  0x7e   :  { %v74_v20 = vadd.f32 %v69_v17, %v62_v18  ;;  %v72_v21 = vadd.f32 %v69_v17, %v58_v19  ;;  %v54_v22 = vpop.xlane.xlu0 %53 }
  0x7f   :  { %v70_v23 = vadd.f32 %v69_v17, %v54_v22 }
  0x80   :  { %v102_v24 = vrot.slane %v74_v20, 4  ;;  %v90_v25 = vrot.slane %v72_v21, 4 }
  0x81   :  { %v78_v26 = vrot.slane %v70_v23, 4 }
  0x82   :  { %v103_v27 = vmax.f32 %v74_v20, %v102_v24  ;;  %v91_v28 = vmax.f32 %v72_v21, %v90_v25 }
  0x83   :  { %v79_v29 = vmax.f32 %v70_v23, %v78_v26 }
  0x84   :  { %v104_v30 = vrot.slane %v103_v27, 2  ;;  %v92_v31 = vrot.slane %v91_v28, 2 }
  0x85   :  { %v80_v32 = vrot.slane %v79_v29, 2  ;;  %v64_v33 = vpop.xlane.xlu2 %63  ;;  %v60_v34 = vpop.xlane.xlu1 %59 }
  0x86   :  { %v105_v35 = vmax.f32 %v103_v27, %v104_v30  ;;  %v93_v36 = vmax.f32 %v91_v28, %v92_v31  ;;  %v75_v37 = vadd.f32 %v69_v17, %v64_v33  ;;  %v73_v38 = vadd.f32 %v69_v17, %v60_v34  ;;  %v56_v39 = vpop.xlane.xlu0 %55 }
  0x87   :  { %v81_v40 = vmax.f32 %v79_v29, %v80_v32  ;;  %v71_v41 = vadd.f32 %v69_v17, %v56_v39 }
  0x88   :  { %v106_v42 = vrot.slane %v105_v35, 1  ;;  %v94_v43 = vrot.slane %v93_v36, 1  ;;  %v108_v44 = vrot.slane %v75_v37, 4  ;;  %v96_v45 = vrot.slane %v73_v38, 4 }
  0x89   :  { %v82_v46 = vrot.slane %v81_v40, 1  ;;  %v84_v47 = vrot.slane %v71_v41, 4 }
  0x8a   :  { %v107_v48 = vmax.f32 %v105_v35, %v106_v42  ;;  %v95_v49 = vmax.f32 %v93_v36, %v94_v43  ;;  %v109_v50 = vmax.f32 %v75_v37, %v108_v44  ;;  %v97_v51 = vmax.f32 %v73_v38, %v96_v45 }
  0x8b   :  { %v83_v52 = vmax.f32 %v81_v40, %v82_v46  ;;  %v85_v53 = vmax.f32 %v71_v41, %v84_v47 }
  0x8c   :  { %v130_v54 = vsub.f32 %v74_v20, %v107_v48  ;;  %v128_v55 = vsub.f32 %v72_v21, %v95_v49  ;;  %v110_v56 = vrot.slane %v109_v50, 2  ;;  %v98_v57 = vrot.slane %v97_v51, 2 }
  0x8d   :  { %v126_v58 = vsub.f32 %v70_v23, %v83_v52  ;;  %v86_v59 = vrot.slane %v85_v53, 2  ;;  %v68_v60 = vpop.xlane.xlu1 %67 }
  0x8e   :  { %v142_v61 = vmul.f32 1.442695, %v130_v54  ;;  %v138_v62 = vmul.f32 1.442695, %v128_v55  ;;  %v111_v63 = vmax.f32 %v109_v50, %v110_v56  ;;  %v99_v1 = vmax.f32 %v97_v51, %v98_v57  ;;  %v66_v4 = vpop.xlane.xlu0 %65 }
  0x8f   :  { %v134_v5 = vmul.f32 1.442695, %v126_v58  ;;  %v87_v6 = vmax.f32 %v85_v53, %v86_v59  ;;  %v77_v10 = vadd.f32 %v69_v17, %v68_v60  ;;  %v569_v11 = vadd.f32 %v69_v17, %v66_v4 }
  0x90   :  { %428 = vpow2.f32 %v142_v61  ;;  %v112_v12 = vrot.slane %v111_v63, 1  ;;  %v100_v15 = vrot.slane %v99_v1, 1 }
  0x91   :  { %430 = vpow2.f32 %v138_v62  ;;  %v88_v16 = vrot.slane %v87_v6, 1  ;;  %v120_v18 = vrot.slane %v77_v10, 4  ;;  %v114_v19 = vrot.slane %v569_v11, 4 }
  0x92   :  { %432 = vpow2.f32 %v134_v5  ;;  %v113_v20 = vmax.f32 %v111_v63, %v112_v12  ;;  %v101_v21 = vmax.f32 %v99_v1, %v100_v15 }
  0x93   :  { %v89_v22 = vmax.f32 %v87_v6, %v88_v16  ;;  %v121_v23 = vmax.f32 %v77_v10, %v120_v18  ;;  %v115_v24 = vmax.f32 %v569_v11, %v114_v19 }
  0x94   :  { %v131_v25 = vsub.f32 %v75_v37, %v113_v20  ;;  %v129_v26 = vsub.f32 %v73_v38, %v101_v21 }
  0x95   :  { %v127_v27 = vsub.f32 %v71_v41, %v89_v22  ;;  %v122_v17 = vrot.slane %v121_v23, 2  ;;  %v116_v28 = vrot.slane %v115_v24, 2 }
  0x96   :  { %v429_v29 = vpop.eup %428  ;;  %v144_v30 = vmul.f32 1.442695, %v131_v25  ;;  %v140_v31 = vmul.f32 1.442695, %v129_v26 }
  0x97   :  { %v431_v32 = vpop.eup %430  ;;  %v174_v33 = vrot.slane %v429_v29, 4  ;;  %v136_v34 = vmul.f32 1.442695, %v127_v27  ;;  %v123_v35 = vmax.f32 %v121_v23, %v122_v17  ;;  %v117_v42 = vmax.f32 %v115_v24, %v116_v28 }
  0x98   :  { %v433_v36 = vpop.eup %432  ;;  %434 = vpow2.f32 %v144_v30  ;;  %v162_v39 = vrot.slane %v431_v32, 4  ;;  %v200_v46 = vmul.f32 %v431_v32, %v544_v2  ;;  %v202_v5 = vmul.f32 %v429_v29, %v539_v0 }
  0x99   :  { %v150_v40 = vrot.slane %v433_v36, 4  ;;  %436 = vpow2.f32 %v140_v31  ;;  %v124_v43 = vrot.slane %v123_v35, 1  ;;  %v175_v37 = vadd.f32 %v429_v29, %v174_v33 }
  0x9a   :  { %438 = vpow2.f32 %v136_v34  ;;  %v198_v41 = vmul.f32 %v433_v36, %v546_v3  ;;  %v163_v45 = vadd.f32 %v431_v32, %v162_v39  ;;  %v118_v48 = vrot.slane %v117_v42, 1 }
  0x9b   :  { %v151_v38 = vadd.f32 %v433_v36, %v150_v40  ;;  %v125_v44 = vmax.f32 %v123_v35, %v124_v43  ;;  %v176_v52 = vrot.slane %v175_v37, 2  ;;  %v218_v60 = vrot.slane %v200_v46, 4 }
  0x9c   :  { %v206_v56 = vrot.slane %v198_v41, 4  ;;  %v164_v59 = vrot.slane %v163_v45, 2  ;;  %v119_v61 = vmax.f32 %v117_v42, %v118_v48  ;;  %v230_v26 = vrot.slane %v202_v5, 4 }
  0x9d   :  { %v152_v47 = vrot.slane %v151_v38, 2  ;;  %v133_v50 = vsub.f32 %v77_v10, %v125_v44  ;;  %v177_v4 = vadd.f32 %v176_v52, %v175_v37  ;;  %v219_v21 = vadd.f32 %v218_v60, %v200_v46 }
  0x9e   :  { %v435_v49 = vpop.eup %434  ;;  %v207_v12 = vadd.f32 %v206_v56, %v198_v41  ;;  %v132_v20 = vsub.f32 %v569_v11, %v119_v61  ;;  %v231_v35 = vadd.f32 %v230_v26, %v202_v5 }
  0x9f   :  { %v437_v51 = vpop.eup %436  ;;  %v153_v53 = vadd.f32 %v152_v47, %v151_v38  ;;  %v180_v54 = vrot.slane %v435_v49, 4  ;;  %v148_v1 = vmul.f32 1.442695, %v133_v50  ;;  %v203_v25 = vmul.f32 %v435_v49, %v551_v7 }
  0xa0   :  { %v439_v55 = vpop.eup %438  ;;  %v168_v57 = vrot.slane %v437_v51, 4  ;;  %v201_v58 = vmul.f32 %v437_v51, %v553_v8  ;;  %v165_v8 = vadd.f32 %v164_v59, %v163_v45  ;;  %v146_v0 = vmul.f32 1.442695, %v132_v20 }
  0xa1   :  { %v154_v3 = vrot.slane %v153_v53, 1  ;;  %v181_v62 = vadd.f32 %v435_v49, %v180_v54  ;;  %v156_v2 = vrot.slane %v439_v55, 4  ;;  %v199_v10 = vmul.f32 %v439_v55, %v555_v9 }
  0xa2   :  { %v169_v63 = vadd.f32 %v437_v51, %v168_v57  ;;  %v224_v16 = vrot.slane %v201_v58, 4  ;;  %v178_v9 = vrot.slane %v177_v4, 1  ;;  %v208_v27 = vrot.slane %v207_v12, 2 }
  0xa3   :  { %v577_v6 = vadd.f32 %v154_v3, %v153_v53  ;;  %v157_v18 = vadd.f32 %v439_v55, %v156_v2  ;;  %v212_v19 = vrot.slane %v199_v10, 4  ;;  %v182_v22 = vrot.slane %v181_v62, 2 }
  0xa4   :  { %v170_v15 = vrot.slane %v169_v63, 2  ;;  %v225_v17 = vadd.f32 %v224_v16, %v201_v58  ;;  %v166_v29 = vrot.slane %v165_v8, 1  ;;  %v220_v31 = vrot.slane %v219_v21, 2 }
  0xa5   :  { %440 = vrcp.f32 %v577_v6  ;;  %v158_v23 = vrot.slane %v157_v18, 2  ;;  %v213_v30 = vadd.f32 %v212_v19, %v199_v10  ;;  %v183_v32 = vadd.f32 %v182_v22, %v181_v62 }
  0xa6   :  { %442 = vpow2.f32 %v148_v1  ;;  %v171_v24 = vadd.f32 %v170_v15, %v169_v63  ;;  %v236_v36 = vrot.slane %v203_v25, 4  ;;  %v585_v40 = vadd.f32 %v178_v9, %v177_v4 }
  0xa7   :  { %v159_v28 = vadd.f32 %v158_v23, %v157_v18  ;;  %444 = vpow2.f32 %v146_v0  ;;  %v209_v7 = vadd.f32 %v208_v27, %v207_v12  ;;  %v226_v43 = vrot.slane %v225_v17, 2 }
  0xa8   :  { %v172_v34 = vrot.slane %v171_v24, 1  ;;  %v589_v37 = vadd.f32 %v166_v29, %v165_v8  ;;  %v214_v38 = vrot.slane %v213_v30, 2  ;;  %v184_v45 = vrot.slane %v183_v32, 1 }
  0xa9   :  { %v160_v33 = vrot.slane %v159_v28, 1  ;;  %v221_v46 = vadd.f32 %v220_v31, %v219_v21  ;;  %v232_v51 = vrot.slane %v231_v35, 2  ;;  %v237_v52 = vadd.f32 %v236_v36, %v203_v25 }
  0xaa   :  { %v595_v49 = vadd.f32 %v172_v34, %v171_v24  ;;  %v227_v55 = vadd.f32 %v226_v43, %v225_v17  ;;  %v210_v57 = vrot.slane %v209_v7, 1  ;;  %v599_v59 = vadd.f32 %v184_v45, %v183_v32 }
  0xab   :  { %v583_v11 = vpop.eup %440  ;;  %v587_v42 = vadd.f32 %v160_v33, %v159_v28  ;;  %v222_v3 = vrot.slane %v221_v46, 1  ;;  %v233_v63 = vadd.f32 %v232_v51, %v231_v35  ;;  %v238_v2 = vrot.slane %v237_v52, 2 }
  0xac   :  { %v443_v39 = vpop.eup %442  ;;  %v255_v47 = vmul.f32 %v583_v11, %v577_v6  ;;  %v228_v4 = vrot.slane %v227_v55, 1  ;;  %v607_v18 = vadd.f32 %v210_v57, %v209_v7  ;;  %vm260_vm0 = vweird.f32 %v583_v11 }
  0xad   :  { %v192_v41 = vrot.slane %v443_v39, 4  ;;  %v205_v44 = vmul.f32 %v443_v39, %v560_v13  ;;  %446 = vrcp.f32 %v587_v42  ;;  %v445_v48 = vpop.eup %444  ;;  %v215_v13 = vadd.f32 %v214_v38, %v213_v30 }
  0xae   :  { %v186_v53 = vrot.slane %v445_v48, 4  ;;  %v204_v54 = vmul.f32 %v445_v48, %v562_v14  ;;  %448 = vrcp.f32 %v589_v37  ;;  %v256_v58 = vsub.f32 1.0, %v255_v47 }
  0xaf   :  { %v193_v50 = vadd.f32 %v443_v39, %v192_v41  ;;  %v248_v56 = vrot.slane %v205_v44, 4  ;;  %450 = vrcp.f32 %v595_v49  ;;  %v216_v12 = vrot.slane %v215_v13, 1 }
  0xb0   :  { %v187_v60 = vadd.f32 %v445_v48, %v186_v53  ;;  %v242_v61 = vrot.slane %v204_v54, 4  ;;  %452 = vrcp.f32 %v585_v40  ;;  %v257_v15 = vmul.f32 %v583_v11, %v256_v58 }
  0xb1   :  { %v194_v62 = vrot.slane %v193_v50, 2  ;;  %v249_v10 = vadd.f32 %v248_v56, %v205_v44  ;;  %454 = vrcp.f32 %v599_v59  ;;  %v609_v8 = vadd.f32 %v222_v3, %v221_v46 }
  0xb2   :  { %v188_v14 = vrot.slane %v187_v60, 2  ;;  %v243_v5 = vadd.f32 %v242_v61, %v204_v54  ;;  %v234_v21 = vrot.slane %v233_v63, 1  ;;  %v613_v22 = vadd.f32 %v238_v2, %v237_v52 }
  0xb3   :  { %v602_v1 = vpop.eup %446  ;;  %v195_v20 = vadd.f32 %v194_v62, %v193_v50  ;;  %v617_v0 = vadd.f32 %v228_v4, %v227_v55  ;;  %v250_v26 = vrot.slane %v249_v10, 2  ;;  %v621_v27 = vadd.f32 %v216_v12, %v215_v13 }
  0xb4   :  { %v189_v16 = vadd.f32 %v188_v14, %v187_v60  ;;  %v611_v19 = vpop.eup %448  ;;  %v270_v23 = vmul.f32 %v602_v1, %v587_v42  ;;  %v244_v25 = vrot.slane %v243_v5, 2  ;;  %v258_v17 = vadd.f32 %v583_v11, %v257_v15 }
  0xb5   :  { %v619_v9 = vpop.eup %450  ;;  %v263_v30 = vand.u32 2147483647, %v577_v6  ;;  %v265_v31 = vand.u32 2147483648, %v577_v6  ;;  %v285_v32 = vmul.f32 %v611_v19, %v589_v37  ;;  %v196_v34 = vrot.slane %v195_v20, 1 }
  0xb6   :  { %v190_v24 = vrot.slane %v189_v16, 1  ;;  %v271_v28 = vsub.f32 1.0, %v270_v23  ;;  %v631_v33 = vpop.eup %452  ;;  %v633_v35 = vadd.f32 %v234_v21, %v233_v63  ;;  %v240_v36 = vrot.slane %v613_v22, 1 }
  0xb7   :  { %vm259_vm1 = vweird.f32 %v577_v6  ;;  %v637_v39 = vpop.eup %454  ;;  %v639_v7 = vadd.f32 %v244_v25, %v243_v5  ;;  %v641_v43 = vadd.f32 %v250_v26, %v249_v10  ;;  %v286_v44 = vsub.f32 1.0, %v285_v32 }
  0xb8   :  { %v625_v29 = vadd.f32 %v190_v24, %v189_v16  ;;  %vm643_vm2 = vmor %vm259_vm1, %vm260_vm0  ;;  %v272_v41 = vmul.f32 %v602_v1, %v271_v28  ;;  %v278_v6 = vand.u32 2147483647, %v587_v42  ;;  %v300_v46 = vmul.f32 %v619_v9, %v595_v49 }
  0xb9   :  { %v262_v45 = vsel %vm643_vm2, %v583_v11, %v258_v17  ;;  %vm264_vm3 = vcmp.eq.f32.partialorder %v263_v30, 8.507059e+37  ;;  %v266_v47 = vor.u32 1.1754944e-38, %v265_v31  ;;  %v280_v48 = vand.u32 2147483648, %v587_v42 }
  0xba   :  { %456 = vrcp.f32 %v625_v29  ;;  %v287_v50 = vmul.f32 %v611_v19, %v286_v44  ;;  %v657_v51 = vadd.f32 %v196_v34, %v195_v20  ;;  %vm274_vm4 = vweird.f32 %v587_v42 }
  0xbb   :  { %vm275_vm5 = vweird.f32 %v602_v1  ;;  %v301_v52 = vsub.f32 1.0, %v300_v46  ;;  %v246_v11 = vrot.slane %v639_v7, 1  ;;  %v267_v53 = vsel %vm264_vm3, %v266_v47, %v262_v45 }
  0xbc   :  { %v273_v54 = vadd.f32 %v602_v1, %v272_v41  ;;  %v293_v55 = vand.u32 2147483647, %v589_v37  ;;  %vm664_vm6 = vcmp.eq.f32.partialorder %v278_v6, 8.507059e+37  ;;  %vm289_vm7 = vweird.f32 %v589_v37  ;;  %vm681_vm9 = vmor %vm274_vm4, %vm275_vm5 }
  0xbd   :  { %v302_v13 = vmul.f32 %v619_v9, %v301_v52  ;;  %v315_v57 = vmul.f32 %v631_v33, %v585_v40  ;;  %v281_v58 = vor.u32 1.1754944e-38, %v280_v48  ;;  %v288_v60 = vadd.f32 %v611_v19, %v287_v50 }
  0xbe   :  { %vm290_vm8 = vweird.f32 %v611_v19  ;;  %v295_v3 = vand.u32 2147483648, %v589_v37  ;;  %vm304_vm10 = vweird.f32 %v595_v49  ;;  %v308_v63 = vand.u32 2147483647, %v595_v49 }
  0xbf   :  { %v316_v2 = vsub.f32 1.0, %v315_v57  ;;  %v330_v14 = vmul.f32 %v637_v39, %v599_v59  ;;  %v277_v4 = vsel %vm681_vm9, %v602_v1, %v273_v54  ;;  %vm692_vm11 = vcmp.eq.f32.partialorder %v293_v55, 8.507059e+37  ;;  %vm700_vm13 = vmor %vm289_vm7, %vm290_vm8 }
  0xc0   :  { %v675_v61 = vpop.eup %456  ;;  %vm305_vm12 = vweird.f32 %v619_v9  ;;  %v310_v42 = vand.u32 2147483648, %v595_v49  ;;  %v303_v12 = vadd.f32 %v619_v9, %v302_v13  ;;  %v323_v1 = vand.u32 2147483647, %v585_v40 }
  0xc1   :  { %v317_v15 = vmul.f32 %v631_v33, %v316_v2  ;;  %v331_v16 = vsub.f32 1.0, %v330_v14  ;;  %v292_v20 = vsel %vm700_vm13, %v611_v19, %v288_v60  ;;  %v296_v21 = vor.u32 1.1754944e-38, %v295_v3  ;;  %vm725_vm0 = vmor %vm304_vm10, %vm305_vm12 }
  0xc2   :  { %v325_v23 = vand.u32 2147483648, %v585_v40  ;;  %v345_v37 = vmul.f32 %v675_v61, %v625_v29  ;;  %v282_v24 = vsel %vm664_vm6, %v281_v58, %v277_v4  ;;  %vm715_vm14 = vcmp.eq.f32.partialorder %v308_v63, 8.507059e+37 }
  0xc3   :  { %v318_v26 = vadd.f32 %v631_v33, %v317_v15  ;;  %vm320_vm15 = vweird.f32 %v631_v33  ;;  %v311_v17 = vor.u32 1.1754944e-38, %v310_v42  ;;  %vm319_vm1 = vweird.f32 %v585_v40 }
  0xc4   :  { %v332_v28 = vmul.f32 %v637_v39, %v331_v16  ;;  %v346_v30 = vsub.f32 1.0, %v345_v37  ;;  %v297_v31 = vsel %vm692_vm11, %v296_v21, %v292_v20  ;;  %v307_v32 = vsel %vm725_vm0, %v619_v9, %v303_v12  ;;  %vm741_vm3 = vmor %vm319_vm1, %vm320_vm15 }
  0xc5   :  { %vm736_vm2 = vcmp.eq.f32.partialorder %v323_v1, 8.507059e+37  ;;  %458 = vrcp.f32 %v657_v51  ;;  %v326_v40 = vor.u32 1.1754944e-38, %v325_v23  ;;  %vm334_vm4 = vweird.f32 %v599_v59 }
  0xc6   :  { %vm335_vm5 = vweird.f32 %v637_v39  ;;  %v347_v38 = vmul.f32 %v675_v61, %v346_v30  ;;  %v322_v9 = vsel %vm741_vm3, %v631_v33, %v318_v26  ;;  %v338_v41 = vand.u32 2147483647, %v599_v59 }
  0xc7   :  { %vm350_vm6 = vweird.f32 %v675_v61  ;;  %v355_v44 = vand.u32 2147483648, %v625_v29  ;;  %v312_v45 = vsel %vm715_vm14, %v311_v17, %v307_v32  ;;  %v333_v6 = vadd.f32 %v637_v39, %v332_v28  ;;  %vm774_vm11 = vmor %vm334_vm4, %vm335_vm5 }
  0xc8   :  { %v348_v46 = vadd.f32 %v675_v61, %v347_v38  ;;  %v375_v47 = vmul.f32 %v282_v24, %v621_v27  ;;  %v340_v48 = vand.u32 2147483648, %v599_v59  ;;  %vm349_vm7 = vweird.f32 %v625_v29 }
  0xc9   :  { %v353_v33 = vand.u32 2147483647, %v625_v29  ;;  %v374_v50 = vmul.f32 %v267_v53, %v607_v18  ;;  %v327_v52 = vsel %vm736_vm2, %v326_v40, %v322_v9  ;;  %vm765_vm8 = vmor %vm349_vm7, %vm350_vm6  ;;  %v376_v55 = vmul.f32 %v297_v31, %v609_v8 }
  0xca   :  { %vm390_vm9 = vcmask 1041409   ;;  %vm392_vm10 = vcmask 1042434   ;;  %v352_v18 = vsel %vm765_vm8, %v675_v61, %v348_v46  ;;  %v356_v53 = vor.u32 1.1754944e-38, %v355_v44 }
  0xcb   :  { %v459_v27 = vpop.eup %458  ;;  %v391_v56 = vsel %vm390_vm9, %v375_v47, %v374_v50  ;;  %vm394_vm12 = vcmask 1043459   ;;  %v337_v8 = vsel %vm774_vm11, %v637_v39, %v333_v6  ;;  %v377_v57 = vmul.f32 %v312_v45, %v617_v0 }
  0xcc   :  { %v360_v13 = vmul.f32 %v459_v27, %v657_v51  ;;  %v393_v59 = vsel %vm392_vm10, %v376_v55, %v391_v56  ;;  %v241_v58 = vadd.f32 %v240_v36, %v613_v22  ;;  %vm339_vm13 = vcmp.eq.f32.partialorder %v338_v41, 8.507059e+37 }
  0xcd   :  { %v341_v60 = vor.u32 1.1754944e-38, %v340_v48  ;;  %vm354_vm14 = vcmp.eq.f32.partialorder %v353_v33, 8.507059e+37  ;;  %v395_v62 = vsel %vm394_vm12, %v377_v57, %v393_v59  ;;  %vm396_vm15 = vcmask 1044484  }
  0xce   :  { %v357_v3 = vsel %vm354_vm14, %v356_v53, %v352_v18  ;;  %v361_v61 = vsub.f32 1.0, %v360_v13  ;;  %v247_v39 = vadd.f32 %v246_v11, %v639_v7  ;;  %v370_v2 = vand.u32 2147483648, %v657_v51 }
  0xcf   :  { %v342_v63 = vsel %vm339_vm13, %v341_v60, %v337_v8  ;;  %v378_v0 = vmul.f32 %v327_v52, %v633_v35  ;;  %v252_v14 = vrot.slane %v641_v43, 1  ;;  %vm365_vm0 = vweird.f32 %v459_v27 }
  0xd0   :  { %v362_v4 = vmul.f32 %v459_v27, %v361_v61  ;;  %v368_v22 = vand.u32 2147483647, %v657_v51  ;;  %v380_v36 = vmul.f32 %v357_v3, %v247_v39  ;;  %vm398_vm1 = vcmask 1045509  }
  0xd1   :  { %v397_v5 = vsel %vm396_vm15, %v378_v0, %v395_v62  ;;  %vm364_vm2 = vweird.f32 %v657_v51  ;;  %v379_v10 = vmul.f32 %v342_v63, %v241_v58  ;;  %vm400_vm3 = vcmask 1046534  }
  0xd2   :  { %v363_v42 = vadd.f32 %v459_v27, %v362_v4  ;;  %vm366_vm4 = vmor %vm364_vm2, %vm365_vm0  ;;  %v371_v7 = vor.u32 1.1754944e-38, %v370_v2  ;;  %v253_v11 = vadd.f32 %v252_v14, %v641_v43  ;;  %vm369_vm5 = vcmp.eq.f32.partialorder %v368_v22, 8.507059e+37 }
  0xd3   :  { %v399_v35 = vsel %vm398_vm1, %v379_v10, %v397_v5  ;;  %vm402_vm6 = vcmask 1047559  }
  0xd4   :  { %v367_v12 = vsel %vm366_vm4, %v459_v27, %v363_v42  ;;  %v401_v1 = vsel %vm400_vm3, %v380_v36, %v399_v35 }
  0xd5   :  { %v372_v15 = vsel %vm369_vm5, %v371_v7, %v367_v12 }
  0xd6   :  { %v381_v16 = vmul.f32 %v372_v15, %v253_v11 }
  0xd8   :  { %v403_v51 = vsel %vm402_vm6, %v381_v16, %v401_v1 }
  0xd9   :  { %405 = vst [vmem:[#allocation6] sm:$0xff] %v403_v51 }
  0xda   :  { %416 = dma.vmem_to_hbm [thread:$0]  %s412_s21, 128, %s414_s24, [#allocation5]  }
  0xdb   :  { %510 = dma.done.wait [#allocation5], 128  }
  0xdc   :  { %511 = vsyncadd [#allocation5], 4294967168 }
  0xdd   :  { %421 = vsyncpa [#allocation4], 1 }
  0xde   :  { %422 = vsyncpa [#allocation5], 1 }

</bundles_post_ra>
